<compile_context>
chip_gen: v7x
topology: tpu7x:2x2x1
jax: 0.10.0
libtpu: 0.0.40
codegen_flags: <defaults>
</compile_context>

<pallas_src>
import jax
import jax.numpy as jnp
from jax.experimental import pallas as pl
from jax.experimental.pallas import tpu as pltpu


def _multi_io_kernel(x_ref, y_ref, sum_ref, mul_ref):
    x = x_ref[...]
    y = y_ref[...]
    sum_ref[...] = x + y
    mul_ref[...] = x * y


# Below this total byte count the fixed pallas_call launch / DMA-setup cost
# dwarfs the HBM time; a fused XLA elementwise pass is already optimal.
_SMALL_BYTES = 256 << 10


def _choose_layout(n_elem, itemsize):
    """Pick a lane-dense (rows, W) layout and a block row count.

    Requires n_elem % 128 == 0 (caller guarantees).  Returns (W, rows,
    tile_rows) with W a multiple of 128 dividing n_elem exactly (no padding),
    and tile_rows a multiple of the dtype's minimum sublane count unless it
    equals the full row extent.
    """
    # Minimum sublane count per packed dtype: f32 -> 8, bf16 -> 16, int8/fp8 -> 32.
    min_sub = {4: 8, 2: 16, 1: 32}.get(itemsize, 8)
    # ~1 MiB per array per block: 2 inputs + 2 outputs, double-buffered ~= 8 MiB
    # VMEM -> under the default scoped limit on every generation (incl. v7x).
    target_block_bytes = 1 << 20

    # Widest lane dimension that divides n_elem exactly (lane-dense output
    # slabs = unmasked wide vst + fewer DMA descriptors per byte).  Prefer a
    # width that still leaves >= min_sub rows.
    W = None
    for cand in (4096, 2048, 1024, 512, 256, 128):
        if n_elem % cand == 0 and (n_elem // cand) >= min_sub:
            W = cand
            break
    if W is None:
        for cand in (4096, 2048, 1024, 512, 256, 128):
            if n_elem % cand == 0:
                W = cand
                break

    rows = n_elem // W

    if rows <= min_sub:
        # Tiny: single block equal to the full array extent (allowed even if
        # rows is not a multiple of the sublane count).
        return W, rows, rows

    # ~1 MiB per array, rounded down to a sublane multiple.
    tile_rows = (target_block_bytes // (W * itemsize)) // min_sub * min_sub
    tile_rows = max(min_sub, tile_rows)

    # Keep at least ~4 grid steps once the problem is non-trivial: both v7x
    # TensorCores get work and input/output DMAs overlap with compute.
    quarter_rows = pl.cdiv(pl.cdiv(rows, 4), min_sub) * min_sub
    tile_rows = min(tile_rows, max(min_sub, quarter_rows))

    tile_rows = min(tile_rows, rows)
    if tile_rows != rows:
        tile_rows = max(min_sub, (tile_rows // min_sub) * min_sub)
    return W, rows, tile_rows


def multiple_input_and_outputs(x, y, *, force_pallas=False):
    """Computes (x + y, x * y); Pallas TPU kernel for streamable shapes.

    x, y: arrays of identical shape/dtype (e.g. NCHW).  Returns (s, m) with
    the same shape/dtype.  `force_pallas=True` bypasses the small-size
    fast path (used for testing); ragged sizes (n_elem % 128 != 0) always
    use the fused-XLA fallback to avoid pad/slice HBM round trips.
    """
    assert x.shape == y.shape and x.dtype == y.dtype
    orig_shape = x.shape
    n_elem = x.size
    itemsize = jnp.dtype(x.dtype).itemsize

    if n_elem % 128 != 0 or (not force_pallas and n_elem * itemsize < _SMALL_BYTES):
        # XLA fuses both elementwise ops into one pass: 4N bytes of HBM
        # traffic, which is already the minimum -- no kernel can beat it, and
        # a pad + slice path would cost ~3x that.
        return x + y, x * y

    W, rows, tile_rows = _choose_layout(n_elem, itemsize)

    # Contiguous reshape: free, no extra HBM round trip, no padding.
    xf = x.reshape(rows, W)
    yf = y.reshape(rows, W)

    grid = (pl.cdiv(rows, tile_rows),)
    block = pl.BlockSpec((tile_rows, W), lambda i: (i, 0))

    s_flat, m_flat = pl.pallas_call(
        _multi_io_kernel,
        out_shape=(
            jax.ShapeDtypeStruct((rows, W), x.dtype),
            jax.ShapeDtypeStruct((rows, W), x.dtype),
        ),
        grid_spec=pltpu.PrefetchScalarGridSpec(
            num_scalar_prefetch=0,
            grid=grid,
            in_specs=[block, block],
            out_specs=(block, block),
        ),
        compiler_params=pltpu.CompilerParams(
            dimension_semantics=("parallel",),
        ),
        cost_estimate=pl.CostEstimate(
            flops=2 * n_elem,
            transcendentals=0,
            bytes_accessed=4 * n_elem * itemsize,
        ),
    )(xf, yf)

    return s_flat.reshape(orig_shape), m_flat.reshape(orig_shape)


if __name__ == "__main__":
    key = jax.random.PRNGKey(0)

    # 1) Small NCHW-shaped inputs (module's typical use), Pallas path forced
    #    so the kernel itself is compiled and run.
    k1, k2, k3, k4, k5, k6 = jax.random.split(key, 6)
    x = jax.random.normal(k1, (2, 4, 16, 16), dtype=jnp.float32)
    y = jax.random.normal(k2, (2, 4, 16, 16), dtype=jnp.float32)
    s, m = multiple_input_and_outputs(x, y, force_pallas=True)
    jax.block_until_ready((s, m))
    assert s.shape == x.shape and m.shape == x.shape
    assert jnp.allclose(s, x + y), "sum mismatch"
    assert jnp.allclose(m, x * y), "product mismatch"

    # 2) Shape exercising a multi-step grid with a partial (masked) last
    #    row-block: 88 * 256 elements -> W=2048, rows=11, tile_rows=8.
    x2 = jax.random.normal(k3, (1, 1, 88, 256), dtype=jnp.float32)
    y2 = jax.random.normal(k4, (1, 1, 88, 256), dtype=jnp.float32)
    s2, m2 = multiple_input_and_outputs(x2, y2, force_pallas=True)
    jax.block_until_ready((s2, m2))
    assert jnp.allclose(s2, x2 + y2), "sum mismatch (partial block)"
    assert jnp.allclose(m2, x2 * y2), "product mismatch (partial block)"

    # 3) Ragged size (not a multiple of 128) -> fused-XLA fallback path.
    x3 = jax.random.normal(k5, (3, 5, 7, 11), dtype=jnp.float32)
    y3 = jax.random.normal(k6, (3, 5, 7, 11), dtype=jnp.float32)
    s3, m3 = multiple_input_and_outputs(x3, y3)
    jax.block_until_ready((s3, m3))
    assert jnp.allclose(s3, x3 + y3) and jnp.allclose(m3, x3 * y3)

    print("KERNEL_OK")
</pallas_src>

<mosaic_0001>
module attributes {stable_mosaic.version = 11 : i64} {
  func.func @_multi_io_kernel(%arg0: i32, %arg1: memref<8x256xf32, #tpu.memory_space<vmem>>, %arg2: memref<8x256xf32, #tpu.memory_space<vmem>>, %arg3: memref<8x256xf32, #tpu.memory_space<vmem>>, %arg4: memref<8x256xf32, #tpu.memory_space<vmem>>) attributes {dimension_semantics = [#tpu.dimension_semantics<parallel>], iteration_bounds = array<i64: 1>, scalar_prefetch = 0 : i64, scratch_operands = 0 : i64, tpu.core_type = #tpu.core_type<tc>, window_params = [{transform_indices = @transform_0, window_bounds = array<i64: 8, 256>}, {transform_indices = @transform_1, window_bounds = array<i64: 8, 256>}, {transform_indices = @transform_2, window_bounds = array<i64: 8, 256>}, {transform_indices = @transform_3, window_bounds = array<i64: 8, 256>}]} {
    %c0 = arith.constant 0 : index
    %c0_0 = arith.constant 0 : index
    %0 = vector.load %arg1[%c0, %c0_0] : memref<8x256xf32, #tpu.memory_space<vmem>>, vector<8x256xf32>
    %c0_1 = arith.constant 0 : index
    %c0_2 = arith.constant 0 : index
    %1 = vector.load %arg2[%c0_1, %c0_2] : memref<8x256xf32, #tpu.memory_space<vmem>>, vector<8x256xf32>
    %2 = arith.addf %0, %1 : vector<8x256xf32>
    %c0_3 = arith.constant 0 : index
    %c0_4 = arith.constant 0 : index
    %3 = vector.load %arg3[%c0_3, %c0_4] : memref<8x256xf32, #tpu.memory_space<vmem>>, vector<8x256xf32>
    tpu.vector_store %arg3[%c0_3, %c0_4], %2 {strides = array<i32>} : memref<8x256xf32, #tpu.memory_space<vmem>>, vector<8x256xf32>,
    %4 = arith.mulf %0, %1 : vector<8x256xf32>
    %c0_5 = arith.constant 0 : index
    %c0_6 = arith.constant 0 : index
    %5 = vector.load %arg4[%c0_5, %c0_6] : memref<8x256xf32, #tpu.memory_space<vmem>>, vector<8x256xf32>
    tpu.vector_store %arg4[%c0_5, %c0_6], %4 {strides = array<i32>} : memref<8x256xf32, #tpu.memory_space<vmem>>, vector<8x256xf32>,
    return
  }
  func.func @transform_0(%arg0: i32) -> (i32, i32) {
    %c0_i32 = arith.constant 0 : i32
    %c0_i32_0 = arith.constant 0 : i32
    return %arg0, %c0_i32 : i32, i32
  }
  func.func @transform_1(%arg0: i32) -> (i32, i32) {
    %c0_i32 = arith.constant 0 : i32
    %c0_i32_0 = arith.constant 0 : i32
    return %arg0, %c0_i32 : i32, i32
  }
  func.func @transform_2(%arg0: i32) -> (i32, i32) {
    %c0_i32 = arith.constant 0 : i32
    %c0_i32_0 = arith.constant 0 : i32
    return %arg0, %c0_i32 : i32, i32
  }
  func.func @transform_3(%arg0: i32) -> (i32, i32) {
    %c0_i32 = arith.constant 0 : i32
    %c0_i32_0 = arith.constant 0 : i32
    return %arg0, %c0_i32 : i32, i32
  }
}

</mosaic_0001>

<bundles_post_ra>
// kernel: tpu_custom_call.1
= control target key start
LH: loop header
LB: loop body
LE: loop exit
PB: predicated region body
PF: predicated region fallthrough
CT: control target
= control target key end

     0   :  { %9 = vsyncpa [#allocation3], 0  ;;  %s253_s0 = inlined_call_operand.hbm [shape: f32[8,256], index: 0, kind: input, shape index: {}]   ;;  %s254_s1 = inlined_call_operand.hbm [shape: f32[8,256], index: 1, kind: input, shape index: {}]   ;;  %s255_s2 = inlined_call_operand.hbm [shape: f32[8,256], index: 2, kind: output, shape index: {0}]   ;;  %s256_s3 = inlined_call_operand.hbm [shape: f32[8,256], index: 3, kind: output, shape index: {1}]  }
   0x1   :  { %10 = vsyncpa [#allocation6], 0 }
   0x2   :  { %11 = vsyncpa [#allocation4], 0 }
   0x3   :  { %12 = vsyncpa [#allocation9], 0  ;;  %s181_s12 = smov [#allocation2]   ;;  %s182_s14 = smov [#allocation5]  }
   0x4   :  { %s19_s13 = sshll.u32 %s181_s12, 4  ;;  %s29_s15 = sshll.u32 %s182_s14, 4  ;;  %s20_s13 = int_to_ptr.vmem [resolvable:$true] %s19_s13  ;;  %s30_s15 = int_to_ptr.vmem [resolvable:$true] %s29_s15 }
   0x5   :  { %s85_s18 = scalar_lea.hbm %s253_s0, 256 }
   0x6   :  { %p86_p0 = scmp.ne.s32.totalorder %s253_s0, %s85_s18  ;;  %p89_p1 = scmp.lt.u32.totalorder %s85_s18, %s253_s0 }
   0x8   :  { %p91_p2 = pnand %p89_p1, %p86_p0 }
   0xa   :  { %94 = shalt.err (!%p91_p2)
}
   0xb   :  { %s95_s23 = scalar_lea.vmem %s20_s13, 256  ;;  %p100_p4 = scmp.lt.s32.totalorder %s20_s13, %s20_s13 }
   0xc   :  { %p96_p3 = scmp.ne.s32.totalorder %s20_s13, %s95_s23  ;;  %p101_p5 = scmp.lt.s32.totalorder %s95_s23, %s95_s23 }
   0xe   :  { %p102_p6 = por %p101_p5, %p100_p4 }
  0x10   :  { %p103_p7 = pnand %p102_p6, %p96_p3 }
  0x12   :  { %106 = shalt.err (!%p103_p7)
}
  0x13   :  { %22 = dma.hbm_to_vmem [thread:$0]  %s253_s0, 256, %s20_s13, [#allocation3]  }
  0x14   :  { %s107_s28 = scalar_lea.hbm %s254_s1, 256 }
  0x15   :  { %p108_p8 = scmp.ne.s32.totalorder %s254_s1, %s107_s28  ;;  %p111_p9 = scmp.lt.u32.totalorder %s107_s28, %s254_s1 }
  0x17   :  { %p113_p10 = pnand %p111_p9, %p108_p8 }
  0x19   :  { %116 = shalt.err (!%p113_p10)
}
  0x1a   :  { %s117_s6 = scalar_lea.vmem %s30_s15, 256  ;;  %p122_p12 = scmp.lt.s32.totalorder %s30_s15, %s30_s15 }
  0x1b   :  { %p118_p11 = scmp.ne.s32.totalorder %s30_s15, %s117_s6  ;;  %p123_p13 = scmp.lt.s32.totalorder %s117_s6, %s117_s6 }
  0x1d   :  { %p124_p0 = por %p123_p13, %p122_p12 }
  0x1f   :  { %p125_p1 = pnand %p124_p0, %p118_p11 }
  0x21   :  { %128 = shalt.err (!%p125_p1)
}
  0x22   :  { %32 = dma.hbm_to_vmem [thread:$0]  %s254_s1, 256, %s30_s15, [#allocation6]  }
  0x23   :  { %173 = dma.done.wait [#allocation3], 256  }
  0x24   :  { %174 = vsyncadd [#allocation3], 4294967040 }
  0x25   :  { %175 = dma.done.wait [#allocation6], 256  }
  0x26   :  { %176 = vsyncadd [#allocation6], 4294967040  ;;  %s183_s8 = smov [#allocation7]   ;;  %v39_v0 = vld [vmem:[#allocation2] sm:$0xff]  ;;  %v41_v1 = vld [vmem:[#allocation5] sm:$0xff]  ;;  %s184_s10 = smov [#allocation8]  }
  0x27   :  { %s57_s9 = sshll.u32 %s183_s8, 4  ;;  %v40_v2 = vld [vmem:[#allocation2 + $0x8] sm:$0xff]  ;;  %s67_s11 = sshll.u32 %s184_s10, 4  ;;  %v43_v3 = vadd.f32 %v41_v1, %v39_v0  ;;  %v42_v4 = vld [vmem:[#allocation5 + $0x8] sm:$0xff]  ;;  %v47_v5 = vmul.f32 %v41_v1, %v39_v0  ;;  %s58_s9 = int_to_ptr.vmem [resolvable:$true] %s57_s9  ;;  %s68_s11 = int_to_ptr.vmem [resolvable:$true] %s67_s11 }
  0x28   :  { %v44_v6 = vadd.f32 %v42_v4, %v40_v2  ;;  %v48_v7 = vmul.f32 %v42_v4, %v40_v2  ;;  %s129_s1 = scalar_lea.vmem %s58_s9, 256  ;;  %p134_p3 = scmp.lt.s32.totalorder %s58_s9, %s58_s9 }
  0x29   :  { %45 = vst [vmem:[#allocation7] sm:$0xff] %v43_v3  ;;  %49 = vst [vmem:[#allocation8] sm:$0xff] %v47_v5  ;;  %p130_p2 = scmp.ne.s32.totalorder %s58_s9, %s129_s1  ;;  %p135_p4 = scmp.lt.s32.totalorder %s129_s1, %s129_s1 }
  0x2a   :  { %46 = vst [vmem:[#allocation7 + $0x8] sm:$0xff] %v44_v6  ;;  %50 = vst [vmem:[#allocation8 + $0x8] sm:$0xff] %v48_v7 }
  0x2b   :  { %p136_p5 = por %p135_p4, %p134_p3 }
  0x2d   :  { %p137_p6 = pnand %p136_p5, %p130_p2 }
  0x2f   :  { %140 = shalt.err (!%p137_p6)
}
  0x30   :  { %s141_s14 = scalar_lea.hbm %s255_s2, 256 }
  0x31   :  { %p142_p7 = scmp.ne.s32.totalorder %s255_s2, %s141_s14  ;;  %p145_p8 = scmp.lt.u32.totalorder %s141_s14, %s255_s2 }
  0x33   :  { %p147_p9 = pnand %p145_p8, %p142_p7 }
  0x35   :  { %150 = shalt.err (!%p147_p9)
}
  0x36   :  { %60 = dma.vmem_to_hbm [thread:$0]  %s58_s9, 256, %s255_s2, [#allocation4]  }
  0x37   :  { %s151_s21 = scalar_lea.vmem %s68_s11, 256  ;;  %p156_p11 = scmp.lt.s32.totalorder %s68_s11, %s68_s11 }
  0x38   :  { %p152_p10 = scmp.ne.s32.totalorder %s68_s11, %s151_s21  ;;  %p157_p12 = scmp.lt.s32.totalorder %s151_s21, %s151_s21 }
  0x3a   :  { %p158_p13 = por %p157_p12, %p156_p11 }
  0x3c   :  { %p159_p0 = pnand %p158_p13, %p152_p10 }
  0x3e   :  { %162 = shalt.err (!%p159_p0)
}
  0x3f   :  { %s163_s24 = scalar_lea.hbm %s256_s3, 256 }
  0x40   :  { %p164_p1 = scmp.ne.s32.totalorder %s256_s3, %s163_s24  ;;  %p167_p2 = scmp.lt.u32.totalorder %s163_s24, %s256_s3 }
  0x42   :  { %p169_p3 = pnand %p167_p2, %p164_p1 }
  0x44   :  { %172 = shalt.err (!%p169_p3)
}
  0x45   :  { %70 = dma.vmem_to_hbm [thread:$0]  %s68_s11, 256, %s256_s3, [#allocation9]  }
  0x46   :  { %177 = dma.done.wait [#allocation4], 256  }
  0x47   :  { %178 = vsyncadd [#allocation4], 4294967040 }
  0x48   :  { %179 = dma.done.wait [#allocation9], 256  }
  0x49   :  { %180 = vsyncadd [#allocation9], 4294967040 }
  0x4a   :  { %77 = vsyncpa [#allocation3], 1 }
  0x4b   :  { %78 = vsyncpa [#allocation6], 1 }
  0x4c   :  { %79 = vsyncpa [#allocation4], 1 }
  0x4d   :  { %80 = vsyncpa [#allocation9], 1 }

</bundles_post_ra>
